<compile_context>
chip_gen: v6e
topology: v6e:2x2x1
jax: 0.10.0
libtpu: 0.0.40
codegen_flags: <defaults>
</compile_context>

<pallas_src>
import functools

import jax
import jax.numpy as jnp
from jax.experimental import pallas as pl
from jax.experimental.pallas import tpu as pltpu

LN_EPS = 1e-5  # torch.nn.LayerNorm default


def _patch_merge_kernel(x_ref, scale_ref, bias_ref, w_ref, o_ref, *,
                        mm_dtype, inv_n):
    """Fused 2x2 merge + LayerNorm(4C) + (4C -> 2C) reduction on one tile.

    x_ref:     (TR, 2, W2, 2C)  TR row-pairs; dim1 = image-row parity.
               [:, 0] holds [x0 | x2] features, [:, 1] holds [x1 | x3].
    scale_ref: (2, 2C) f32      row 0 = gamma for [x0|x2], row 1 for [x1|x3]
    bias_ref:  (2, 2C) f32      same layout for beta
    w_ref:     (2, 2C, 2C_out)  W_A (rows for x0,x2) and W_B (rows for x1,x3)
    o_ref:     (TR*W2, 2C_out)
    """
    xf = x_ref[...].astype(jnp.float32)          # single up-cast of the tile
    a = xf[:, 0]                                 # (TR, W2, 2C)
    b = xf[:, 1]                                 # (TR, W2, 2C)

    # One-pass LayerNorm statistics over the full 4C features of each pixel.
    s = jnp.sum(a, axis=-1, keepdims=True) + jnp.sum(b, axis=-1, keepdims=True)
    ss = (jnp.sum(a * a, axis=-1, keepdims=True) +
          jnp.sum(b * b, axis=-1, keepdims=True))
    mean = s * inv_n
    var = ss * inv_n - mean * mean
    rstd = jax.lax.rsqrt(var + LN_EPS)

    sc = scale_ref[...]                          # (2, 2C) f32
    bi = bias_ref[...]
    xa = (a - mean) * rstd * sc[0:1, :] + bi[0:1, :]
    xb = (b - mean) * rstd * sc[1:2, :] + bi[1:2, :]

    tr, w2, c2 = xa.shape
    xa2 = xa.reshape(tr * w2, c2).astype(mm_dtype)   # tile-aligned collapse
    xb2 = xb.reshape(tr * w2, c2).astype(mm_dtype)

    acc = jnp.dot(xa2, w_ref[0], preferred_element_type=jnp.float32)
    acc = acc + jnp.dot(xb2, w_ref[1], preferred_element_type=jnp.float32)
    o_ref[...] = acc.astype(o_ref.dtype)


def patch_merge(x, gamma, beta, weight, *, rows_per_tile=1024,
                max_tile_bytes=4 * 1024 * 1024, matmul_in_bf16=None):
    """PatchMerge forward.

    x:      (B, H, W, C)  channels-last (same as the torch forward)
    gamma:  (4C,)         LayerNorm weight
    beta:   (4C,)         LayerNorm bias
    weight: (2C, 4C)      torch Linear weight (out_features, in_features)
    returns (B, H//2, W//2, 2C)
    """
    B, H, W, C = x.shape
    assert H % 2 == 0 and W % 2 == 0
    H2, W2 = H // 2, W // 2
    c2, c4, cout = 2 * C, 4 * C, 2 * C

    if matmul_in_bf16 is None:
        matmul_in_bf16 = (x.dtype == jnp.bfloat16)
    mm_dtype = jnp.bfloat16 if matmul_in_bf16 else jnp.float32

    # Free reshape: (B,H,W,C) -> (R, 2, W2, 2C).  R = B*H2 image row-pairs,
    # dim1 = row parity, last dim packs the [w-even | w-odd] pixel channels.
    R = B * H2
    x4 = x.reshape(R, 2, W2, c2)

    # Pad W2 to a multiple of 8 (keeps the in-kernel (TR,W2,2C)->(TR*W2,2C)
    # collapse tile-aligned and the output block 8-row aligned) and pad R to a
    # multiple of the row-pair tile.  Padded pixels are dropped at the end.
    w2p = ((W2 + 7) // 8) * 8 if W2 % 8 else W2

    # Row-pair tile: ~rows_per_tile merged pixels per grid step, capped by a
    # VMEM budget so the double-buffered streams stay small on 64 MiB v7x.
    tr = max(1, rows_per_tile // w2p)
    bytes_per_pair = 2 * w2p * c2 * x.dtype.itemsize
    tr = max(1, min(tr, max_tile_bytes // max(bytes_per_pair, 1), R))
    rp = ((R + tr - 1) // tr) * tr

    if w2p != W2 or rp != R:
        x4 = jnp.pad(x4, ((0, rp - R), (0, 0), (0, w2p - W2), (0, 0)))

    # Host-side re-blocking of LN affine params and reduction weight so their
    # channel order matches the fused [x0|x2] / [x1|x3] layout (torch concat
    # order is [x0,x1,x2,x3]).  gamma/beta stay f32 (LayerNorm correctness).
    g = gamma.astype(jnp.float32).reshape(4, C)
    bt = beta.astype(jnp.float32).reshape(4, C)
    wt = weight.reshape(cout, 4, C)                       # cols per chunk
    scale = jnp.stack([jnp.concatenate([g[0], g[2]]),
                       jnp.concatenate([g[1], g[3]])])    # (2, 2C)
    bias = jnp.stack([jnp.concatenate([bt[0], bt[2]]),
                      jnp.concatenate([bt[1], bt[3]])])   # (2, 2C)
    w_a = jnp.concatenate([wt[:, 0, :], wt[:, 2, :]], axis=-1).T  # (2C, 2C_out)
    w_b = jnp.concatenate([wt[:, 1, :], wt[:, 3, :]], axis=-1).T
    w_ab = jnp.stack([w_a, w_b]).astype(mm_dtype)                 # (2, 2C, 2C_out)

    n_pad = rp * w2p
    grid = (rp // tr,)
    kernel = functools.partial(_patch_merge_kernel,
                               mm_dtype=mm_dtype, inv_n=1.0 / float(c4))

    out2d = pl.pallas_call(
        kernel,
        out_shape=jax.ShapeDtypeStruct((n_pad, cout), x.dtype),
        grid_spec=pltpu.PrefetchScalarGridSpec(
            num_scalar_prefetch=0,
            grid=grid,
            in_specs=[
                pl.BlockSpec((tr, 2, w2p, c2), lambda i: (i, 0, 0, 0)),  # x tile
                pl.BlockSpec((2, c2), lambda i: (0, 0)),                 # gamma
                pl.BlockSpec((2, c2), lambda i: (0, 0)),                 # beta
                pl.BlockSpec((2, c2, cout), lambda i: (0, 0, 0)),        # weight
            ],
            out_specs=pl.BlockSpec((tr * w2p, cout), lambda i: (i, 0)),
        ),
        compiler_params=pltpu.CompilerParams(
            dimension_semantics=("parallel",),
            vmem_limit_bytes=48 * 1024 * 1024),
    )(x4, scale, bias, w_ab)

    out = out2d.reshape(rp, w2p, cout)
    if w2p != W2 or rp != R:
        out = out[:R, :W2]
    return out.reshape(B, H2, W2, cout)


def patch_merge_reference(x, gamma, beta, weight):
    """Pure-JAX reference matching the torch module semantics."""
    x0 = x[:, 0::2, 0::2, :]
    x1 = x[:, 1::2, 0::2, :]
    x2 = x[:, 0::2, 1::2, :]
    x3 = x[:, 1::2, 1::2, :]
    xm = jnp.concatenate([x0, x1, x2, x3], axis=-1).astype(jnp.float32)
    mean = jnp.mean(xm, axis=-1, keepdims=True)
    var = jnp.mean((xm - mean) ** 2, axis=-1, keepdims=True)
    xn = (xm - mean) * jax.lax.rsqrt(var + LN_EPS)
    xn = xn * gamma.astype(jnp.float32) + beta.astype(jnp.float32)
    return jnp.einsum("bhwk,ok->bhwo", xn, weight.astype(jnp.float32))


if __name__ == "__main__":
    key = jax.random.PRNGKey(0)
    k_x, k_g, k_b, k_w = jax.random.split(key, 4)

    B, H, W, C = 2, 16, 16, 4        # channel_dim = 4
    x = jax.random.normal(k_x, (B, H, W, C), dtype=jnp.float32)
    gamma = 1.0 + 0.1 * jax.random.normal(k_g, (4 * C,), dtype=jnp.float32)
    beta = 0.1 * jax.random.normal(k_b, (4 * C,), dtype=jnp.float32)
    weight = 0.1 * jax.random.normal(k_w, (2 * C, 4 * C), dtype=jnp.float32)

    ref = patch_merge_reference(x, gamma, beta, weight)

    # f32 path: strict check against the reference.
    out = jax.block_until_ready(patch_merge(x, gamma, beta, weight))
    assert out.shape == (B, H // 2, W // 2, 2 * C), out.shape
    assert jnp.allclose(out, ref.astype(out.dtype), atol=1e-4, rtol=1e-4), (
        float(jnp.max(jnp.abs(out - ref))))

    # bf16 activations -> bf16 MXU path (looser tolerance).
    out_bf16 = jax.block_until_ready(
        patch_merge(x.astype(jnp.bfloat16), gamma, beta, weight))
    assert out_bf16.shape == (B, H // 2, W // 2, 2 * C)
    assert float(jnp.max(jnp.abs(out_bf16.astype(jnp.float32) - ref))) < 5e-2

    print("KERNEL_OK")
</pallas_src>

<mosaic_0001>
module attributes {stable_mosaic.version = 11 : i64} {
  func.func @_patch_merge_kernel(%arg0: i32, %arg1: memref<16x2x8x8xf32, #tpu.memory_space<vmem>>, %arg2: memref<2x8xf32, #tpu.memory_space<vmem>>, %arg3: memref<2x8xf32, #tpu.memory_space<vmem>>, %arg4: memref<2x8x8xf32, #tpu.memory_space<vmem>>, %arg5: memref<128x8xf32, #tpu.memory_space<vmem>>) attributes {dimension_semantics = [#tpu.dimension_semantics<parallel>], iteration_bounds = array<i64: 1>, scalar_prefetch = 0 : i64, scratch_operands = 0 : i64, tpu.core_type = #tpu.core_type<tc>, window_params = [{transform_indices = @transform_0, window_bounds = array<i64: 16, 2, 8, 8>}, {pipeline_mode = #tpu.pipeline_mode<synchronous>, transform_indices = @transform_1, window_bounds = array<i64: 2, 8>}, {pipeline_mode = #tpu.pipeline_mode<synchronous>, transform_indices = @transform_2, window_bounds = array<i64: 2, 8>}, {pipeline_mode = #tpu.pipeline_mode<synchronous>, transform_indices = @transform_3, window_bounds = array<i64: 2, 8, 8>}, {transform_indices = @transform_4, window_bounds = array<i64: 128, 8>}]} {
    %c0 = arith.constant 0 : index
    %c0_0 = arith.constant 0 : index
    %c0_1 = arith.constant 0 : index
    %c0_2 = arith.constant 0 : index
    %0 = vector.load %arg1[%c0, %c0_0, %c0_1, %c0_2] : memref<16x2x8x8xf32, #tpu.memory_space<vmem>>, vector<16x2x8x8xf32>
    %1 = vector.extract_strided_slice %0 {offsets = [0, 0, 0, 0], sizes = [16, 1, 8, 8], strides = [1, 1, 1, 1]} : vector<16x2x8x8xf32> to vector<16x1x8x8xf32>
    %2 = vector.shape_cast %1 : vector<16x1x8x8xf32> to vector<16x8x8xf32>
    %3 = vector.extract_strided_slice %0 {offsets = [0, 1, 0, 0], sizes = [16, 1, 8, 8], strides = [1, 1, 1, 1]} : vector<16x2x8x8xf32> to vector<16x1x8x8xf32>
    %4 = vector.shape_cast %3 : vector<16x1x8x8xf32> to vector<16x8x8xf32>
    %cst = arith.constant dense<0.000000e+00> : vector<16x8xf32>
    %5 = vector.multi_reduction <add>, %2, %cst [2] : vector<16x8x8xf32> to vector<16x8xf32>
    %6 = vector.shape_cast %5 : vector<16x8xf32> to vector<16x8x1xf32>
    %cst_3 = arith.constant dense<0.000000e+00> : vector<16x8xf32>
    %7 = vector.multi_reduction <add>, %4, %cst_3 [2] : vector<16x8x8xf32> to vector<16x8xf32>
    %8 = vector.shape_cast %7 : vector<16x8xf32> to vector<16x8x1xf32>
    %9 = arith.addf %6, %8 : vector<16x8x1xf32>
    %10 = arith.mulf %2, %2 : vector<16x8x8xf32>
    %cst_4 = arith.constant dense<0.000000e+00> : vector<16x8xf32>
    %11 = vector.multi_reduction <add>, %10, %cst_4 [2] : vector<16x8x8xf32> to vector<16x8xf32>
    %12 = vector.shape_cast %11 : vector<16x8xf32> to vector<16x8x1xf32>
    %13 = arith.mulf %4, %4 : vector<16x8x8xf32>
    %cst_5 = arith.constant dense<0.000000e+00> : vector<16x8xf32>
    %14 = vector.multi_reduction <add>, %13, %cst_5 [2] : vector<16x8x8xf32> to vector<16x8xf32>
    %15 = vector.shape_cast %14 : vector<16x8xf32> to vector<16x8x1xf32>
    %16 = arith.addf %12, %15 : vector<16x8x1xf32>
    %cst_6 = arith.constant 6.250000e-02 : f32
    %17 = vector.broadcast %cst_6 : f32 to vector<16x8x1xf32>
    %18 = arith.mulf %9, %17 : vector<16x8x1xf32>
    %cst_7 = arith.constant 6.250000e-02 : f32
    %19 = vector.broadcast %cst_7 : f32 to vector<16x8x1xf32>
    %20 = arith.mulf %16, %19 : vector<16x8x1xf32>
    %21 = arith.mulf %18, %18 : vector<16x8x1xf32>
    %22 = arith.subf %20, %21 : vector<16x8x1xf32>
    %cst_8 = arith.constant 9.99999974E-6 : f32
    %23 = vector.broadcast %cst_8 : f32 to vector<16x8x1xf32>
    %24 = arith.addf %22, %23 : vector<16x8x1xf32>
    %25 = math.rsqrt %24 : vector<16x8x1xf32>
    %c0_9 = arith.constant 0 : index
    %c0_10 = arith.constant 0 : index
    %26 = vector.load %arg2[%c0_9, %c0_10] : memref<2x8xf32, #tpu.memory_space<vmem>>, vector<2x8xf32>
    %c0_11 = arith.constant 0 : index
    %c0_12 = arith.constant 0 : index
    %27 = vector.load %arg3[%c0_11, %c0_12] : memref<2x8xf32, #tpu.memory_space<vmem>>, vector<2x8xf32>
    %28 = vector.broadcast %18 : vector<16x8x1xf32> to vector<16x8x8xf32>
    %29 = arith.subf %2, %28 : vector<16x8x8xf32>
    %30 = vector.broadcast %25 : vector<16x8x1xf32> to vector<16x8x8xf32>
    %31 = arith.mulf %29, %30 : vector<16x8x8xf32>
    %32 = vector.extract_strided_slice %26 {offsets = [0, 0], sizes = [1, 8], strides = [1, 1]} : vector<2x8xf32> to vector<1x8xf32>
    %33 = vector.shape_cast %32 : vector<1x8xf32> to vector<1x1x8xf32>
    %34 = vector.broadcast %33 : vector<1x1x8xf32> to vector<16x8x8xf32>
    %35 = arith.mulf %31, %34 : vector<16x8x8xf32>
    %36 = vector.extract_strided_slice %27 {offsets = [0, 0], sizes = [1, 8], strides = [1, 1]} : vector<2x8xf32> to vector<1x8xf32>
    %37 = vector.shape_cast %36 : vector<1x8xf32> to vector<1x1x8xf32>
    %38 = vector.broadcast %37 : vector<1x1x8xf32> to vector<16x8x8xf32>
    %39 = arith.addf %35, %38 : vector<16x8x8xf32>
    %40 = vector.broadcast %18 : vector<16x8x1xf32> to vector<16x8x8xf32>
    %41 = arith.subf %4, %40 : vector<16x8x8xf32>
    %42 = vector.broadcast %25 : vector<16x8x1xf32> to vector<16x8x8xf32>
    %43 = arith.mulf %41, %42 : vector<16x8x8xf32>
    %44 = vector.extract_strided_slice %26 {offsets = [1, 0], sizes = [1, 8], strides = [1, 1]} : vector<2x8xf32> to vector<1x8xf32>
    %45 = vector.shape_cast %44 : vector<1x8xf32> to vector<1x1x8xf32>
    %46 = vector.broadcast %45 : vector<1x1x8xf32> to vector<16x8x8xf32>
    %47 = arith.mulf %43, %46 : vector<16x8x8xf32>
    %48 = vector.extract_strided_slice %27 {offsets = [1, 0], sizes = [1, 8], strides = [1, 1]} : vector<2x8xf32> to vector<1x8xf32>
    %49 = vector.shape_cast %48 : vector<1x8xf32> to vector<1x1x8xf32>
    %50 = vector.broadcast %49 : vector<1x1x8xf32> to vector<16x8x8xf32>
    %51 = arith.addf %47, %50 : vector<16x8x8xf32>
    %52 = vector.shape_cast %39 : vector<16x8x8xf32> to vector<128x8xf32>
    %53 = vector.shape_cast %51 : vector<16x8x8xf32> to vector<128x8xf32>
    %c0_13 = arith.constant 0 : index
    %c0_14 = arith.constant 0 : index
    %c0_15 = arith.constant 0 : index
    %54 = vector.load %arg4[%c0_13, %c0_14, %c0_15] : memref<2x8x8xf32, #tpu.memory_space<vmem>>, vector<1x8x8xf32>
    %55 = vector.shape_cast %54 : vector<1x8x8xf32> to vector<8x8xf32>
    %cst_16 = arith.constant dense<0.000000e+00> : vector<128x8xf32>
    %56 = tpu.matmul %52, %55, %cst_16 {dimension_numbers = #tpu.dot_dimension_numbers<[1], [0], [0], [1], [0, 0, 1, 1], [], []>} : vector<128x8xf32>, vector<8x8xf32>, vector<128x8xf32> -> vector<128x8xf32>
    %c1 = arith.constant 1 : index
    %c0_17 = arith.constant 0 : index
    %c0_18 = arith.constant 0 : index
    %57 = vector.load %arg4[%c1, %c0_17, %c0_18] : memref<2x8x8xf32, #tpu.memory_space<vmem>>, vector<1x8x8xf32>
    %58 = vector.shape_cast %57 : vector<1x8x8xf32> to vector<8x8xf32>
    %cst_19 = arith.constant dense<0.000000e+00> : vector<128x8xf32>
    %59 = tpu.matmul %53, %58, %cst_19 {dimension_numbers = #tpu.dot_dimension_numbers<[1], [0], [0], [1], [0, 0, 1, 1], [], []>} : vector<128x8xf32>, vector<8x8xf32>, vector<128x8xf32> -> vector<128x8xf32>
    %60 = arith.addf %56, %59 : vector<128x8xf32>
    %c0_20 = arith.constant 0 : index
    %c0_21 = arith.constant 0 : index
    %61 = vector.load %arg5[%c0_20, %c0_21] : memref<128x8xf32, #tpu.memory_space<vmem>>, vector<128x8xf32>
    tpu.vector_store %arg5[%c0_20, %c0_21], %60 {strides = array<i32>} : memref<128x8xf32, #tpu.memory_space<vmem>>, vector<128x8xf32>,
    return
  }
  func.func @transform_0(%arg0: i32) -> (i32, i32, i32, i32) {
    %c0_i32 = arith.constant 0 : i32
    %c0_i32_0 = arith.constant 0 : i32
    %c0_i32_1 = arith.constant 0 : i32
    %c0_i32_2 = arith.constant 0 : i32
    return %arg0, %c0_i32, %c0_i32_0, %c0_i32_1 : i32, i32, i32, i32
  }
  func.func @transform_1(%arg0: i32) -> (i32, i32) {
    %c0_i32 = arith.constant 0 : i32
    %c0_i32_0 = arith.constant 0 : i32
    %c0_i32_1 = arith.constant 0 : i32
    return %c0_i32, %c0_i32_0 : i32, i32
  }
  func.func @transform_2(%arg0: i32) -> (i32, i32) {
    %c0_i32 = arith.constant 0 : i32
    %c0_i32_0 = arith.constant 0 : i32
    %c0_i32_1 = arith.constant 0 : i32
    return %c0_i32, %c0_i32_0 : i32, i32
  }
  func.func @transform_3(%arg0: i32) -> (i32, i32, i32) {
    %c0_i32 = arith.constant 0 : i32
    %c0_i32_0 = arith.constant 0 : i32
    %c0_i32_1 = arith.constant 0 : i32
    %c0_i32_2 = arith.constant 0 : i32
    return %c0_i32, %c0_i32_0, %c0_i32_1 : i32, i32, i32
  }
  func.func @transform_4(%arg0: i32) -> (i32, i32) {
    %c0_i32 = arith.constant 0 : i32
    %c0_i32_0 = arith.constant 0 : i32
    return %arg0, %c0_i32 : i32, i32
  }
}

</mosaic_0001>

<bundles_post_ra>
// kernel: tpu_custom_call.1
= control target key start
LH: loop header
LB: loop body
LE: loop exit
PB: predicated region body
PF: predicated region fallthrough
CT: control target
= control target key end

     0   :  { %vm49_vm0 = vcmask 64512   ;;  %s1743_s0 = inlined_call_operand.vmem [shape: f32[16,2,8,8], index: 0, kind: input, shape index: {}]   ;;  %s1744_s3 = inlined_call_operand.vmem [shape: f32[2,8,8], index: 3, kind: input, shape index: {}]   ;;  %s1745_s1 = inlined_call_operand.vmem [shape: f32[2,8], index: 1, kind: input, shape index: {}]   ;;  %s1746_s2 = inlined_call_operand.vmem [shape: f32[2,8], index: 2, kind: input, shape index: {}]   ;;  %s1747_s4 = inlined_call_operand.vmem [shape: f32[128,8], index: 4, kind: output, shape index: {}]  }
   0x1   :  { %v1136_v0 = vld [vmem:[%s1743_s0 + $0x10] sm:$0xff]  ;;  %v1141_v1 = vld [vmem:[%s1743_s0] sm:$0xff]  ;;  %v1146_v2 = vld [vmem:[%s1743_s0 + $0x18] sm:$0xff] }
   0x2   :  { %v53_v3 = vsel %vm49_vm0, %v1136_v0, 0.0  ;;  %v50_v4 = vsel %vm49_vm0, %v1141_v1, 0.0  ;;  %v1155_v5 = vld [vmem:[%s1743_s0 + $0x8] sm:$0xff]  ;;  %v101_v6 = vsel %vm49_vm0, %v1146_v2, 0.0  ;;  %v162_v9 = vmul.f32 %v1141_v1, %v1141_v1  ;;  %v1181_v17 = vld [vmem:[%s1743_s0 + $0x20] sm:$0xff]  ;;  %v1190_v20 = vld [vmem:[%s1743_s0 + $0x38] sm:$0xff] }
   0x3   :  { %54 = vadd.xlane.f32.xlu1 %v53_v3  ;;  %51 = vadd.xlane.f32.xlu0 %v50_v4  ;;  %v98_v7 = vsel %vm49_vm0, %v1155_v5, 0.0  ;;  %v226_v8 = vmul.f32 %v1155_v5, %v1155_v5  ;;  %v227_v12 = vmul.f32 %v1146_v2, %v1146_v2  ;;  %v163_v13 = vmul.f32 %v1136_v0, %v1136_v0  ;;  %v1176_v16 = vld [vmem:[%s1743_s0 + $0x28] sm:$0xff]  ;;  %v1195_v21 = vld [vmem:[%s1743_s0 + $0x30] sm:$0xff]  ;;  %v1221_v33 = vld [vmem:[%s1743_s0 + $0x40] sm:$0xff] }
   0x4   :  { %v178_v11 = vsel %vm49_vm0, %v162_v9, 0.0  ;;  %v104_v18 = vsel %vm49_vm0, %v1176_v16, 0.0  ;;  %v56_v19 = vsel %vm49_vm0, %v1181_v17, 0.0  ;;  %v107_v22 = vsel %vm49_vm0, %v1190_v20, 0.0  ;;  %v1216_v32 = vld [vmem:[%s1743_s0 + $0x48] sm:$0xff]  ;;  %v1230_v36 = vld [vmem:[%s1743_s0 + $0x58] sm:$0xff] }
   0x5   :  { %v242_v10 = vsel %vm49_vm0, %v226_v8, 0.0  ;;  %v245_v14 = vsel %vm49_vm0, %v227_v12, 0.0  ;;  %v181_v15 = vsel %vm49_vm0, %v163_v13, 0.0  ;;  %v59_v23 = vsel %vm49_vm0, %v1195_v21, 0.0  ;;  %v1235_v37 = vld [vmem:[%s1743_s0 + $0x50] sm:$0xff]  ;;  %v1256_v48 = vld [vmem:[%s1743_s0 + $0x68] sm:$0xff] }
   0x6   :  { %v228_v24 = vmul.f32 %v1176_v16, %v1176_v16  ;;  %v164_v25 = vmul.f32 %v1181_v17, %v1181_v17  ;;  %v229_v28 = vmul.f32 %v1190_v20, %v1190_v20  ;;  %v165_v29 = vmul.f32 %v1195_v21, %v1195_v21  ;;  %v1261_v49 = vld [vmem:[%s1743_s0 + $0x60] sm:$0xff]  ;;  %v1270_v52 = vld [vmem:[%s1743_s0 + $0x78] sm:$0xff]  ;;  %v1275_v53 = vld [vmem:[%s1743_s0 + $0x70] sm:$0xff] }
   0x7   :  { %102 = vadd.xlane.f32.xlu1 %v101_v6  ;;  %99 = vadd.xlane.f32.xlu0 %v98_v7  ;;  %v110_v34 = vsel %vm49_vm0, %v1216_v32, 0.0  ;;  %v62_v35 = vsel %vm49_vm0, %v1221_v33, 0.0  ;;  %v113_v38 = vsel %vm49_vm0, %v1230_v36, 0.0  ;;  %v65_v39 = vsel %vm49_vm0, %v1235_v37, 0.0  ;;  %v957_v54 = vld [vmem:[%s1744_s3 + $0x8] sm:$0xff]  ;;  %v548_v55 = vld [vmem:[%s1744_s3] sm:$0xff] }
   0x8   :  { %v248_v26 = vsel %vm49_vm0, %v228_v24, 0.0  ;;  %v184_v27 = vsel %vm49_vm0, %v164_v25, 0.0  ;;  %v251_v30 = vsel %vm49_vm0, %v229_v28, 0.0  ;;  %v187_v31 = vsel %vm49_vm0, %v165_v29, 0.0  ;;  %1024 = vmatprep.subr.mxu0 %v957_v54  ;;  %1050 = vmatprep.subr.mxu1 %v548_v55  ;;  %v1302_v6 = vld [vmem:[%s1743_s0 + $0x88] sm:$0xff]  ;;  %v1307_v7 = vld [vmem:[%s1743_s0 + $0x80] sm:$0xff] }
   0x9   :  { %v230_v40 = vmul.f32 %v1216_v32, %v1216_v32  ;;  %v166_v41 = vmul.f32 %v1221_v33, %v1221_v33  ;;  %v231_v44 = vmul.f32 %v1230_v36, %v1230_v36  ;;  %v167_v45 = vmul.f32 %v1235_v37, %v1235_v37  ;;  %1025 = vmatpush3.msra.mxu0 %v957_v54  ;;  %v1396_v54 = vld [vmem:[%s1743_s0 + $0xd8] sm:$0xff] }
   0xa   :  { %v116_v50 = vsel %vm49_vm0, %v1256_v48, 0.0  ;;  %v68_v51 = vsel %vm49_vm0, %v1261_v49, 0.0  ;;  %v119_v56 = vsel %vm49_vm0, %v1270_v52, 0.0  ;;  %v71_v57 = vsel %vm49_vm0, %v1275_v53, 0.0  ;;  %1051 = vmatpush3.msra.mxu1 %v548_v55  ;;  %v1401_v55 = vld [vmem:[%s1743_s0 + $0xd0] sm:$0xff] }
   0xb   :  { %243 = vadd.xlane.f32.xlu1 %v242_v10  ;;  %179 = vadd.xlane.f32.xlu0 %v178_v11  ;;  %v254_v42 = vsel %vm49_vm0, %v230_v40, 0.0  ;;  %v190_v43 = vsel %vm49_vm0, %v166_v41, 0.0  ;;  %v257_v46 = vsel %vm49_vm0, %v231_v44, 0.0  ;;  %v193_v47 = vsel %vm49_vm0, %v167_v45, 0.0  ;;  %v1316_v10 = vld [vmem:[%s1743_s0 + $0x98] sm:$0xff]  ;;  %v1321_v11 = vld [vmem:[%s1743_s0 + $0x90] sm:$0xff] }
   0xc   :  { %v232_v58 = vmul.f32 %v1256_v48, %v1256_v48  ;;  %v168_v59 = vmul.f32 %v1261_v49, %v1261_v49  ;;  %v233_v62 = vmul.f32 %v1270_v52, %v1270_v52  ;;  %v169_v63 = vmul.f32 %v1275_v53, %v1275_v53 }
   0xd   :  { %v122_v8 = vsel %vm49_vm0, %v1302_v6, 0.0  ;;  %v74_v9 = vsel %vm49_vm0, %v1307_v7, 0.0  ;;  %v125_v12 = vsel %vm49_vm0, %v1316_v10, 0.0  ;;  %v77_v13 = vsel %vm49_vm0, %v1321_v11, 0.0 }
   0xe   :  { %v260_v60 = vsel %vm49_vm0, %v232_v58, 0.0  ;;  %v196_v61 = vsel %vm49_vm0, %v168_v59, 0.0  ;;  %v263_v3 = vsel %vm49_vm0, %v233_v62, 0.0  ;;  %v199_v4 = vsel %vm49_vm0, %v169_v63, 0.0 }
   0xf   :  { %246 = vadd.xlane.f32.xlu1 %v245_v14  ;;  %182 = vadd.xlane.f32.xlu0 %v181_v15  ;;  %v234_v14 = vmul.f32 %v1302_v6, %v1302_v6  ;;  %v170_v15 = vmul.f32 %v1307_v7, %v1307_v7  ;;  %v239_v62 = vmul.f32 %v1396_v54, %v1396_v54 }
  0x10   :  { %v175_v63 = vmul.f32 %v1401_v55, %v1401_v55 }
  0x13   :  { %105 = vadd.xlane.f32.xlu1 %v104_v18  ;;  %57 = vadd.xlane.f32.xlu0 %v56_v19  ;;  %v266_v18 = vsel %vm49_vm0, %v234_v14, 0.0  ;;  %v202_v19 = vsel %vm49_vm0, %v170_v15, 0.0  ;;  %v1436_v14 = vld [vmem:[%s1743_s0 + $0xf8] sm:$0xff]  ;;  %v1441_v15 = vld [vmem:[%s1743_s0 + $0xf0] sm:$0xff] }
  0x17   :  { %108 = vadd.xlane.f32.xlu1 %v107_v22  ;;  %60 = vadd.xlane.f32.xlu0 %v59_v23  ;;  %v235_v22 = vmul.f32 %v1316_v10, %v1316_v10  ;;  %v171_v23 = vmul.f32 %v1321_v11, %v1321_v11 }
  0x19   :  { %v269_v24 = vsel %vm49_vm0, %v235_v22, 0.0  ;;  %v205_v25 = vsel %vm49_vm0, %v171_v23, 0.0 }
  0x1b   :  { %249 = vadd.xlane.f32.xlu1 %v248_v26  ;;  %185 = vadd.xlane.f32.xlu0 %v184_v27  ;;  %v1342_v26 = vld [vmem:[%s1743_s0 + $0xa8] sm:$0xff]  ;;  %v1347_v27 = vld [vmem:[%s1743_s0 + $0xa0] sm:$0xff] }
  0x1c   :  { %v128_v28 = vsel %vm49_vm0, %v1342_v26, 0.0  ;;  %v80_v29 = vsel %vm49_vm0, %v1347_v27, 0.0 }
  0x1f   :  { %252 = vadd.xlane.f32.xlu1 %v251_v30  ;;  %188 = vadd.xlane.f32.xlu0 %v187_v31  ;;  %v1356_v30 = vld [vmem:[%s1743_s0 + $0xb8] sm:$0xff]  ;;  %v1361_v31 = vld [vmem:[%s1743_s0 + $0xb0] sm:$0xff] }
  0x23   :  { %111 = vadd.xlane.f32.xlu1 %v110_v34  ;;  %63 = vadd.xlane.f32.xlu0 %v62_v35  ;;  %v131_v34 = vsel %vm49_vm0, %v1356_v30, 0.0  ;;  %v83_v35 = vsel %vm49_vm0, %v1361_v31, 0.0 }
  0x27   :  { %114 = vadd.xlane.f32.xlu1 %v113_v38  ;;  %66 = vadd.xlane.f32.xlu0 %v65_v39  ;;  %v236_v38 = vmul.f32 %v1342_v26, %v1342_v26  ;;  %v172_v39 = vmul.f32 %v1347_v27, %v1347_v27 }
  0x29   :  { %v272_v40 = vsel %vm49_vm0, %v236_v38, 0.0  ;;  %v208_v41 = vsel %vm49_vm0, %v172_v39, 0.0 }
  0x2b   :  { %255 = vadd.xlane.f32.xlu1 %v254_v42  ;;  %191 = vadd.xlane.f32.xlu0 %v190_v43  ;;  %v237_v42 = vmul.f32 %v1356_v30, %v1356_v30  ;;  %v173_v43 = vmul.f32 %v1361_v31, %v1361_v31 }
  0x2d   :  { %v275_v44 = vsel %vm49_vm0, %v237_v42, 0.0  ;;  %v211_v45 = vsel %vm49_vm0, %v173_v43, 0.0 }
  0x2f   :  { %258 = vadd.xlane.f32.xlu1 %v257_v46  ;;  %194 = vadd.xlane.f32.xlu0 %v193_v47  ;;  %v1382_v46 = vld [vmem:[%s1743_s0 + $0xc8] sm:$0xff]  ;;  %v1387_v47 = vld [vmem:[%s1743_s0 + $0xc0] sm:$0xff] }
  0x30   :  { %v238_v58 = vmul.f32 %v1382_v46, %v1382_v46  ;;  %v174_v59 = vmul.f32 %v1387_v47, %v1387_v47 }
  0x33   :  { %117 = vadd.xlane.f32.xlu1 %v116_v50  ;;  %69 = vadd.xlane.f32.xlu0 %v68_v51  ;;  %v134_v50 = vsel %vm49_vm0, %v1382_v46, 0.0  ;;  %v86_v51 = vsel %vm49_vm0, %v1387_v47, 0.0 }
  0x37   :  { %120 = vadd.xlane.f32.xlu1 %v119_v56  ;;  %72 = vadd.xlane.f32.xlu0 %v71_v57  ;;  %v137_v56 = vsel %vm49_vm0, %v1396_v54, 0.0  ;;  %v89_v57 = vsel %vm49_vm0, %v1401_v55, 0.0 }
  0x3b   :  { %261 = vadd.xlane.f32.xlu1 %v260_v60  ;;  %197 = vadd.xlane.f32.xlu0 %v196_v61  ;;  %v278_v60 = vsel %vm49_vm0, %v238_v58, 0.0  ;;  %v214_v61 = vsel %vm49_vm0, %v174_v59, 0.0 }
  0x3f   :  { %264 = vadd.xlane.f32.xlu1 %v263_v3  ;;  %200 = vadd.xlane.f32.xlu0 %v199_v4  ;;  %v281_v3 = vsel %vm49_vm0, %v239_v62, 0.0  ;;  %v217_v4 = vsel %vm49_vm0, %v175_v63, 0.0 }
  0x43   :  { %123 = vadd.xlane.f32.xlu1 %v122_v8  ;;  %75 = vadd.xlane.f32.xlu0 %v74_v9  ;;  %v1422_v8 = vld [vmem:[%s1743_s0 + $0xe8] sm:$0xff]  ;;  %v1427_v9 = vld [vmem:[%s1743_s0 + $0xe0] sm:$0xff] }
  0x44   :  { %v240_v22 = vmul.f32 %v1422_v8, %v1422_v8  ;;  %v176_v23 = vmul.f32 %v1427_v9, %v1427_v9 }
  0x47   :  { %126 = vadd.xlane.f32.xlu1 %v125_v12  ;;  %78 = vadd.xlane.f32.xlu0 %v77_v13  ;;  %v140_v12 = vsel %vm49_vm0, %v1422_v8, 0.0  ;;  %v92_v13 = vsel %vm49_vm0, %v1427_v9, 0.0 }
  0x4b   :  { %267 = vadd.xlane.f32.xlu1 %v266_v18  ;;  %203 = vadd.xlane.f32.xlu0 %v202_v19  ;;  %v143_v18 = vsel %vm49_vm0, %v1436_v14, 0.0  ;;  %v95_v19 = vsel %vm49_vm0, %v1441_v15, 0.0 }
  0x4f   :  { %270 = vadd.xlane.f32.xlu1 %v269_v24  ;;  %206 = vadd.xlane.f32.xlu0 %v205_v25  ;;  %v284_v24 = vsel %vm49_vm0, %v240_v22, 0.0  ;;  %v220_v25 = vsel %vm49_vm0, %v176_v23, 0.0 }
  0x53   :  { %129 = vadd.xlane.f32.xlu1 %v128_v28  ;;  %81 = vadd.xlane.f32.xlu0 %v80_v29  ;;  %v241_v28 = vmul.f32 %v1436_v14, %v1436_v14  ;;  %v177_v29 = vmul.f32 %v1441_v15, %v1441_v15 }
  0x57   :  { %132 = vadd.xlane.f32.xlu1 %v131_v34  ;;  %84 = vadd.xlane.f32.xlu0 %v83_v35  ;;  %v287_v34 = vsel %vm49_vm0, %v241_v28, 0.0  ;;  %v223_v35 = vsel %vm49_vm0, %v177_v29, 0.0 }
  0x5b   :  { %273 = vadd.xlane.f32.xlu1 %v272_v40  ;;  %209 = vadd.xlane.f32.xlu0 %v208_v41 }
  0x5f   :  { %276 = vadd.xlane.f32.xlu1 %v275_v44  ;;  %212 = vadd.xlane.f32.xlu0 %v211_v45 }
  0x63   :  { %135 = vadd.xlane.f32.xlu1 %v134_v50  ;;  %87 = vadd.xlane.f32.xlu0 %v86_v51 }
  0x67   :  { %138 = vadd.xlane.f32.xlu1 %v137_v56  ;;  %90 = vadd.xlane.f32.xlu0 %v89_v57 }
  0x6b   :  { %279 = vadd.xlane.f32.xlu1 %v278_v60  ;;  %215 = vadd.xlane.f32.xlu0 %v214_v61 }
  0x6f   :  { %282 = vadd.xlane.f32.xlu1 %v281_v3  ;;  %218 = vadd.xlane.f32.xlu0 %v217_v4 }
  0x73   :  { %141 = vadd.xlane.f32.xlu1 %v140_v12  ;;  %93 = vadd.xlane.f32.xlu0 %v92_v13 }
  0x77   :  { %144 = vadd.xlane.f32.xlu1 %v143_v18  ;;  %96 = vadd.xlane.f32.xlu0 %v95_v19  ;;  %v436_v19 = vlaneseq }
  0x79   :  { %v437_v28 = vshrl.u32 %v436_v19, 7 }
  0x7b   :  { %285 = vadd.xlane.f32.xlu1 %v284_v24  ;;  %221 = vadd.xlane.f32.xlu0 %v220_v25 }
  0x7f   :  { %288 = vadd.xlane.f32.xlu1 %v287_v34  ;;  %224 = vadd.xlane.f32.xlu0 %v223_v35 }
  0x8c   :  { %v55_v38 = vpop.xlane.xlu1 %54  ;;  %v52_v39 = vpop.xlane.xlu0 %51 }
  0x90   :  { %v103_v40 = vpop.xlane.xlu1 %102  ;;  %v100_v41 = vpop.xlane.xlu0 %99 }
  0x91   :  { %v146_v42 = vadd.f32 %v100_v41, %v52_v39  ;;  %v147_v43 = vadd.f32 %v103_v40, %v55_v38  ;;  %v510_v40 = vsub.s32 1, %v437_v28  ;;  %v438_v41 = vsub.s32 0, %v437_v28 }
  0x93   :  { %v306_v44 = vmul.f32 0.0625, %v146_v42  ;;  %v1459_v56 = vmul.f32 0.0625, %v147_v43 }
  0x94   :  { %v244_v45 = vpop.xlane.xlu1 %243  ;;  %v180_v50 = vpop.xlane.xlu0 %179 }
  0x95   :  { %v290_v51 = vadd.f32 %v244_v45, %v180_v50  ;;  %v338_v57 = vmul.f32 %v306_v44, %v306_v44  ;;  %v339_v63 = vmul.f32 %v1459_v56, %v1459_v56  ;;  %v402_v50 = vld [vmem:[%s1745_s1] sm:$0x3] }
  0x97   :  { %v322_v58 = vmul.f32 0.0625, %v290_v51 }
  0x98   :  { %v247_v59 = vpop.xlane.xlu1 %246  ;;  %v183_v60 = vpop.xlane.xlu0 %182 }
  0x99   :  { %v291_v61 = vadd.f32 %v247_v59, %v183_v60  ;;  %v354_v62 = vsub.f32 %v322_v58, %v338_v57  ;;  %v403_v60 = vld [vmem:[%s1746_s2] sm:$0x3] }
  0x9a   :  { %v1485_v28 = vrot.slane %v403_v60, %v438_v41 }
  0x9b   :  { %v323_v3 = vmul.f32 0.0625, %v291_v61  ;;  %v370_v4 = vadd.f32 1e-05, %v354_v62  ;;  %v404_v61 = vsub.f32 %v1141_v1, %v306_v44  ;;  %v476_v62 = vsub.f32 %v1155_v5, %v306_v44 }
  0x9c   :  { %v106_v12 = vpop.xlane.xlu1 %105  ;;  %v58_v13 = vpop.xlane.xlu0 %57  ;;  %v405_v1 = vsub.f32 %v1136_v0, %v1459_v56  ;;  %v477_v5 = vsub.f32 %v1146_v2, %v1459_v56 }
  0x9d   :  { %v355_v18 = vsub.f32 %v323_v3, %v339_v63  ;;  %1076 = vrsqrt.f32 %v370_v4  ;;  %v148_v23 = vadd.f32 %v106_v12, %v58_v13  ;;  %v1477_v63 = vrot.slane %v402_v50, %v510_v40 }
  0x9e   :  { %v1479_v3 = vrot.slane %v402_v50, %v438_v41 }
  0x9f   :  { %v371_v22 = vadd.f32 1e-05, %v355_v18  ;;  %v1463_v29 = vmul.f32 0.0625, %v148_v23 }
  0xa0   :  { %v109_v24 = vpop.xlane.xlu1 %108  ;;  %v61_v25 = vpop.xlane.xlu0 %60 }
  0xa1   :  { %1078 = vrsqrt.f32 %v371_v22  ;;  %v149_v34 = vadd.f32 %v109_v24, %v61_v25  ;;  %v340_v43 = vmul.f32 %v1463_v29, %v1463_v29  ;;  %v1483_v24 = vrot.slane %v403_v60, %v510_v40 }
  0xa3   :  { %v1465_v42 = vmul.f32 0.0625, %v149_v34 }
  0xa4   :  { %v250_v35 = vpop.xlane.xlu1 %249  ;;  %v186_v38 = vpop.xlane.xlu0 %185 }
  0xa5   :  { %v292_v39 = vadd.f32 %v250_v35, %v186_v38  ;;  %v341_v13 = vmul.f32 %v1465_v42, %v1465_v42 }
  0xa7   :  { %v324_v45 = vmul.f32 0.0625, %v292_v39 }
  0xa8   :  { %v253_v51 = vpop.xlane.xlu1 %252  ;;  %v189_v57 = vpop.xlane.xlu0 %188 }
  0xa9   :  { %v356_v58 = vsub.f32 %v324_v45, %v340_v43  ;;  %v293_v59 = vadd.f32 %v253_v51, %v189_v57 }
  0xaa   :  { %v1077_v4 = vpop.eup %1076 }
  0xab   :  { %v372_v12 = vadd.f32 1e-05, %v356_v58  ;;  %v325_v18 = vmul.f32 0.0625, %v293_v59  ;;  %v492_v23 = vmul.f32 %v1077_v4, %v476_v62  ;;  %v420_v25 = vmul.f32 %v1077_v4, %v404_v61 }
  0xac   :  { %v112_v19 = vpop.xlane.xlu1 %111  ;;  %v64_v22 = vpop.xlane.xlu0 %63 }
  0xad   :  { %1080 = vrsqrt.f32 %v372_v12  ;;  %v357_v44 = vsub.f32 %v325_v18, %v341_v13  ;;  %v512_v35 = vmul.f32 %v1477_v63, %v492_v23  ;;  %v440_v38 = vmul.f32 %v1479_v3, %v420_v25 }
  0xae   :  { %v1079_v34 = vpop.eup %1078  ;;  %v150_v43 = vadd.f32 %v112_v19, %v64_v22  ;;  %v406_v23 = vsub.f32 %v1181_v17, %v1463_v29  ;;  %v478_v25 = vsub.f32 %v1176_v16, %v1463_v29  ;;  %v407_v29 = vsub.f32 %v1195_v21, %v1465_v42 }
  0xaf   :  { %v373_v39 = vadd.f32 1e-05, %v357_v44  ;;  %v493_v40 = vmul.f32 %v1079_v34, %v477_v5  ;;  %v421_v45 = vmul.f32 %v1079_v34, %v405_v1  ;;  %v532_v51 = vadd.f32 %v1483_v24, %v512_v35 }
  0xb0   :  { %v115_v50 = vpop.xlane.xlu1 %114  ;;  %v67_v41 = vpop.xlane.xlu0 %66  ;;  %v460_v0 = vadd.f32 %v1485_v28, %v440_v38  ;;  %v1499_v58 = vmul.f32 0.0625, %v150_v43 }
  0xb1   :  { %1082 = vrsqrt.f32 %v373_v39  ;;  %v151_v57 = vadd.f32 %v115_v50, %v67_v41  ;;  %1026 = vmatprep.mubr.msk.f32.mxu0 %vm49_vm0, %v532_v51  ;;  %v513_v2 = vmul.f32 %v1477_v63, %v493_v40  ;;  %v441_v56 = vmul.f32 %v1479_v3, %v421_v45 }
  0xb2   :  { %1052 = vmatprep.mubr.msk.f32.mxu1 %vm49_vm0, %v460_v0  ;;  %v342_v13 = vmul.f32 %v1499_v58, %v1499_v58  ;;  %v479_v50 = vsub.f32 %v1190_v20, %v1465_v42 }
  0xb3   :  { %v533_v61 = vadd.f32 %v1483_v24, %v513_v2  ;;  %v461_v62 = vadd.f32 %v1485_v28, %v441_v56  ;;  %v1503_v12 = vmul.f32 0.0625, %v151_v57 }
  0xb4   :  { %v256_v59 = vpop.xlane.xlu1 %255  ;;  %v192_v60 = vpop.xlane.xlu0 %191 }
  0xb5   :  { %v294_v4 = vadd.f32 %v256_v59, %v192_v60  ;;  %1027 = vmatmul.mubr.msk.f32.vlgmr.msra.gmra.mxu0 %vm49_vm0, %v533_v61  ;;  %1053 = vmatmul.mubr.msk.f32.vlgmr.msra.gmra.mxu1 %vm49_vm0, %v461_v62  ;;  %v343_v34 = vmul.f32 %v1503_v12, %v1503_v12 }
  0xb7   :  { %v326_v18 = vmul.f32 0.0625, %v294_v4 }
  0xb8   :  { %v259_v19 = vpop.xlane.xlu1 %258  ;;  %v195_v22 = vpop.xlane.xlu0 %194 }
  0xb9   :  { %v358_v1 = vsub.f32 %v326_v18, %v342_v13  ;;  %v295_v5 = vadd.f32 %v259_v19, %v195_v22 }
  0xba   :  { %v1081_v44 = vpop.eup %1080 }
  0xbb   :  { %v374_v35 = vadd.f32 1e-05, %v358_v1  ;;  %v327_v38 = vmul.f32 0.0625, %v295_v5  ;;  %v494_v39 = vmul.f32 %v1081_v44, %v478_v25  ;;  %v422_v43 = vmul.f32 %v1081_v44, %v406_v23 }
  0xbc   :  { %v118_v40 = vpop.xlane.xlu1 %117  ;;  %v70_v45 = vpop.xlane.xlu0 %69 }
  0xbd   :  { %1084 = vrsqrt.f32 %v374_v35  ;;  %v359_v17 = vsub.f32 %v327_v38, %v343_v34  ;;  %v514_v41 = vmul.f32 %v1477_v63, %v494_v39  ;;  %v442_v51 = vmul.f32 %v1479_v3, %v422_v43 }
  0xbe   :  { %v1083_v16 = vpop.eup %1082  ;;  %v152_v57 = vadd.f32 %v118_v40, %v70_v45  ;;  %v408_v35 = vsub.f32 %v1221_v33, %v1499_v58  ;;  %v480_v38 = vsub.f32 %v1216_v32, %v1499_v58  ;;  %v409_v58 = vsub.f32 %v1235_v37, %v1503_v12 }
  0xbf   :  { %v375_v0 = vadd.f32 1e-05, %v359_v17  ;;  %v534_v2 = vadd.f32 %v1483_v24, %v514_v41  ;;  %v495_v56 = vmul.f32 %v1083_v16, %v479_v50  ;;  %v462_v61 = vadd.f32 %v1485_v28, %v442_v51 }
  0xc0   :  { %v121_v59 = vpop.xlane.xlu1 %120  ;;  %v73_v60 = vpop.xlane.xlu0 %72  ;;  %v423_v20 = vmul.f32 %v1083_v16, %v407_v29  ;;  %v1527_v4 = vmul.f32 0.0625, %v152_v57 }
  0xc1   :  { %1086 = vrsqrt.f32 %v375_v0  ;;  %1029 = vmatprep.mubr.msk.f32.mxu0 %vm49_vm0, %v534_v2  ;;  %v153_v62 = vadd.f32 %v121_v59, %v73_v60  ;;  %1055 = vmatprep.mubr.msk.f32.mxu1 %vm49_vm0, %v462_v61  ;;  %v515_v21 = vmul.f32 %v1477_v63, %v495_v56  ;;  %v481_v0 = vsub.f32 %v1230_v36, %v1503_v12 }
  0xc2   :  { %v443_v42 = vmul.f32 %v1479_v3, %v423_v20  ;;  %v344_v1 = vmul.f32 %v1527_v4, %v1527_v4 }
  0xc3   :  { %v535_v19 = vadd.f32 %v1483_v24, %v515_v21  ;;  %v1531_v25 = vmul.f32 0.0625, %v153_v62 }
  0xc4   :  { %v262_v13 = vpop.xlane.xlu1 %261  ;;  %v198_v18 = vpop.xlane.xlu0 %197  ;;  %v463_v22 = vadd.f32 %v1485_v28, %v443_v42 }
  0xc5   :  { %v296_v23 = vadd.f32 %v262_v13, %v198_v18  ;;  %1030 = vmatmul.mubr.msk.f32.gmra.mxu0 %vm49_vm0, %v535_v19  ;;  %v345_v45 = vmul.f32 %v1531_v25, %v1531_v25 }
  0xc6   :  { %1056 = vmatmul.mubr.msk.f32.gmra.mxu1 %vm49_vm0, %v463_v22 }
  0xc7   :  { %v328_v5 = vmul.f32 0.0625, %v296_v23 }
  0xc8   :  { %v265_v44 = vpop.xlane.xlu1 %264  ;;  %v201_v34 = vpop.xlane.xlu0 %200 }
  0xc9   :  { %v360_v39 = vsub.f32 %v328_v5, %v344_v1  ;;  %v297_v43 = vadd.f32 %v265_v44, %v201_v34 }
  0xca   :  { %v1085_v40 = vpop.eup %1084 }
  0xcb   :  { %v376_v50 = vadd.f32 1e-05, %v360_v39  ;;  %v329_v17 = vmul.f32 0.0625, %v297_v43  ;;  %v496_v41 = vmul.f32 %v1085_v40, %v480_v38  ;;  %v424_v16 = vmul.f32 %v1085_v40, %v408_v35 }
  0xcc   :  { %v124_v29 = vpop.xlane.xlu1 %123  ;;  %v76_v51 = vpop.xlane.xlu0 %75  ;;  %v410_v39 = vsub.f32 %v1261_v49, %v1527_v4  ;;  %v482_v43 = vsub.f32 %v1256_v48, %v1527_v4  ;;  %v411_v4 = vsub.f32 %v1275_v53, %v1531_v25 }
  0xcd   :  { %1088 = vrsqrt.f32 %v376_v50  ;;  %v361_v33 = vsub.f32 %v329_v17, %v345_v45  ;;  %v516_v57 = vmul.f32 %v1477_v63, %v496_v41  ;;  %v444_v2 = vmul.f32 %v1479_v3, %v424_v16 }
  0xce   :  { %v1087_v32 = vpop.eup %1086  ;;  %v154_v59 = vadd.f32 %v124_v29, %v76_v51 }
  0xcf   :  { %v377_v56 = vadd.f32 1e-05, %v361_v33  ;;  %v536_v60 = vadd.f32 %v1483_v24, %v516_v57  ;;  %v497_v61 = vmul.f32 %v1087_v32, %v481_v0  ;;  %v464_v21 = vadd.f32 %v1485_v28, %v444_v2 }
  0xd0   :  { %v127_v20 = vpop.xlane.xlu1 %126  ;;  %v79_v62 = vpop.xlane.xlu0 %78  ;;  %v425_v36 = vmul.f32 %v1087_v32, %v409_v58  ;;  %v1555_v13 = vmul.f32 0.0625, %v154_v59  ;;  %v483_v57 = vsub.f32 %v1270_v52, %v1531_v25 }
  0xd1   :  { %1090 = vrsqrt.f32 %v377_v56  ;;  %1032 = vmatprep.mubr.msk.f32.mxu0 %vm49_vm0, %v536_v60  ;;  %v155_v42 = vadd.f32 %v127_v20, %v79_v62  ;;  %1058 = vmatprep.mubr.msk.f32.mxu1 %vm49_vm0, %v464_v21  ;;  %v517_v37 = vmul.f32 %v1477_v63, %v497_v61 }
  0xd2   :  { %v445_v12 = vmul.f32 %v1479_v3, %v425_v36  ;;  %v346_v44 = vmul.f32 %v1555_v13, %v1555_v13 }
  0xd3   :  { %v537_v22 = vadd.f32 %v1483_v24, %v517_v37  ;;  %v1559_v5 = vmul.f32 0.0625, %v155_v42 }
  0xd4   :  { %v268_v18 = vpop.xlane.xlu1 %267  ;;  %v204_v19 = vpop.xlane.xlu0 %203  ;;  %v465_v23 = vadd.f32 %v1485_v28, %v445_v12 }
  0xd5   :  { %v298_v1 = vadd.f32 %v268_v18, %v204_v19  ;;  %1033 = vmatmul.mubr.msk.f32.gmra.mxu0 %vm49_vm0, %v537_v22  ;;  %v347_v17 = vmul.f32 %v1559_v5, %v1559_v5 }
  0xd6   :  { %1059 = vmatmul.mubr.msk.f32.gmra.mxu1 %vm49_vm0, %v465_v23 }
  0xd7   :  { %v330_v34 = vmul.f32 0.0625, %v298_v1 }
  0xd8   :  { %v271_v35 = vpop.xlane.xlu1 %270  ;;  %v207_v38 = vpop.xlane.xlu0 %206 }
  0xd9   :  { %v362_v40 = vsub.f32 %v330_v34, %v346_v44  ;;  %v299_v45 = vadd.f32 %v271_v35, %v207_v38  ;;  %v412_v35 = vsub.f32 %v1307_v7, %v1555_v13  ;;  %v484_v38 = vsub.f32 %v1302_v6, %v1555_v13 }
  0xda   :  { %v1089_v50 = vpop.eup %1088  ;;  %v413_v13 = vsub.f32 %v1321_v11, %v1559_v5 }
  0xdb   :  { %v378_v41 = vadd.f32 1e-05, %v362_v40  ;;  %v331_v16 = vmul.f32 0.0625, %v299_v45  ;;  %v498_v29 = vmul.f32 %v1089_v50, %v482_v43  ;;  %v426_v51 = vmul.f32 %v1089_v50, %v410_v39 }
  0xdc   :  { %v130_v0 = vpop.xlane.xlu1 %129  ;;  %v82_v33 = vpop.xlane.xlu0 %81 }
  0xdd   :  { %1092 = vrsqrt.f32 %v378_v41  ;;  %v363_v49 = vsub.f32 %v331_v16, %v347_v17  ;;  %v518_v32 = vmul.f32 %v1477_v63, %v498_v29  ;;  %v446_v58 = vmul.f32 %v1479_v3, %v426_v51 }
  0xde   :  { %v1091_v48 = vpop.eup %1090  ;;  %v156_v56 = vadd.f32 %v130_v0, %v82_v33  ;;  %v485_v0 = vsub.f32 %v1316_v10, %v1559_v5 }
  0xdf   :  { %v379_v2 = vadd.f32 1e-05, %v363_v49  ;;  %v538_v59 = vadd.f32 %v1483_v24, %v518_v32  ;;  %v499_v60 = vmul.f32 %v1091_v48, %v483_v57  ;;  %v466_v62 = vadd.f32 %v1485_v28, %v446_v58 }
  0xe0   :  { %v133_v61 = vpop.xlane.xlu1 %132  ;;  %v85_v20 = vpop.xlane.xlu0 %84  ;;  %v427_v52 = vmul.f32 %v1091_v48, %v411_v4  ;;  %v1583_v36 = vmul.f32 0.0625, %v156_v56 }
  0xe1   :  { %1094 = vrsqrt.f32 %v379_v2  ;;  %1035 = vmatprep.mubr.msk.f32.mxu0 %vm49_vm0, %v538_v59  ;;  %v157_v21 = vadd.f32 %v133_v61, %v85_v20  ;;  %1061 = vmatprep.mubr.msk.f32.mxu1 %vm49_vm0, %v466_v62  ;;  %v519_v53 = vmul.f32 %v1477_v63, %v499_v60 }
  0xe2   :  { %v447_v25 = vmul.f32 %v1479_v3, %v427_v52  ;;  %v348_v23 = vmul.f32 %v1583_v36, %v1583_v36 }
  0xe3   :  { %v539_v12 = vadd.f32 %v1483_v24, %v519_v53  ;;  %v1587_v22 = vmul.f32 0.0625, %v157_v21 }
  0xe4   :  { %v274_v42 = vpop.xlane.xlu1 %273  ;;  %v210_v37 = vpop.xlane.xlu0 %209  ;;  %v467_v18 = vadd.f32 %v1485_v28, %v447_v25 }
  0xe5   :  { %v300_v19 = vadd.f32 %v274_v42, %v210_v37  ;;  %1036 = vmatmul.mubr.msk.f32.gmra.mxu0 %vm49_vm0, %v539_v12  ;;  %v349_v45 = vmul.f32 %v1587_v22, %v1587_v22 }
  0xe6   :  { %1062 = vmatmul.mubr.msk.f32.gmra.mxu1 %vm49_vm0, %v467_v18  ;;  %v414_v18 = vsub.f32 %v1347_v27, %v1583_v36 }
  0xe7   :  { %v332_v1 = vmul.f32 0.0625, %v300_v19  ;;  %v486_v19 = vsub.f32 %v1342_v26, %v1583_v36  ;;  %v415_v36 = vsub.f32 %v1361_v31, %v1587_v22 }
  0xe8   :  { %v277_v44 = vpop.xlane.xlu1 %276  ;;  %v213_v34 = vpop.xlane.xlu0 %212 }
  0xe9   :  { %v364_v39 = vsub.f32 %v332_v1, %v348_v23  ;;  %v301_v43 = vadd.f32 %v277_v44, %v213_v34 }
  0xea   :  { %v1093_v40 = vpop.eup %1092 }
  0xeb   :  { %v380_v50 = vadd.f32 1e-05, %v364_v39  ;;  %v333_v17 = vmul.f32 0.0625, %v301_v43  ;;  %v500_v41 = vmul.f32 %v1093_v40, %v484_v38  ;;  %v428_v16 = vmul.f32 %v1093_v40, %v412_v35 }
  0xec   :  { %v136_v29 = vpop.xlane.xlu1 %135  ;;  %v88_v51 = vpop.xlane.xlu0 %87 }
  0xed   :  { %1096 = vrsqrt.f32 %v380_v50  ;;  %v365_v7 = vsub.f32 %v333_v17, %v349_v45  ;;  %v520_v33 = vmul.f32 %v1477_v63, %v500_v41  ;;  %v448_v57 = vmul.f32 %v1479_v3, %v428_v16 }
  0xee   :  { %v1095_v6 = vpop.eup %1094  ;;  %v158_v32 = vadd.f32 %v136_v29, %v88_v51  ;;  %v487_v50 = vsub.f32 %v1356_v30, %v1587_v22 }
  0xef   :  { %v381_v49 = vadd.f32 1e-05, %v365_v7  ;;  %v540_v48 = vadd.f32 %v1483_v24, %v520_v33  ;;  %v501_v4 = vmul.f32 %v1095_v6, %v485_v0  ;;  %v468_v56 = vadd.f32 %v1485_v28, %v448_v57 }
  0xf0   :  { %v139_v58 = vpop.xlane.xlu1 %138  ;;  %v91_v2 = vpop.xlane.xlu0 %90  ;;  %v429_v10 = vmul.f32 %v1095_v6, %v413_v13  ;;  %v1611_v60 = vmul.f32 0.0625, %v158_v32 }
  0xf1   :  { %1098 = vrsqrt.f32 %v381_v49  ;;  %1038 = vmatprep.mubr.msk.f32.mxu0 %vm49_vm0, %v540_v48  ;;  %v159_v59 = vadd.f32 %v139_v58, %v91_v2  ;;  %1064 = vmatprep.mubr.msk.f32.mxu1 %vm49_vm0, %v468_v56  ;;  %v521_v11 = vmul.f32 %v1477_v63, %v501_v4 }
  0xf2   :  { %v449_v5 = vmul.f32 %v1479_v3, %v429_v10  ;;  %v350_v25 = vmul.f32 %v1611_v60, %v1611_v60 }
  0xf3   :  { %v541_v62 = vadd.f32 %v1483_v24, %v521_v11  ;;  %v1615_v53 = vmul.f32 0.0625, %v159_v59 }
  0xf4   :  { %v280_v61 = vpop.xlane.xlu1 %279  ;;  %v216_v20 = vpop.xlane.xlu0 %215  ;;  %v469_v52 = vadd.f32 %v1485_v28, %v449_v5  ;;  %v416_v5 = vsub.f32 %v1387_v47, %v1611_v60 }
  0xf5   :  { %v302_v21 = vadd.f32 %v280_v61, %v216_v20  ;;  %1039 = vmatmul.mubr.msk.f32.gmra.mxu0 %vm49_vm0, %v541_v62  ;;  %v351_v34 = vmul.f32 %v1615_v53, %v1615_v53  ;;  %v488_v61 = vsub.f32 %v1382_v46, %v1611_v60  ;;  %v417_v46 = vsub.f32 %v1401_v55, %v1615_v53 }
  0xf6   :  { %1065 = vmatmul.mubr.msk.f32.gmra.mxu1 %vm49_vm0, %v469_v52 }
  0xf7   :  { %v334_v42 = vmul.f32 0.0625, %v302_v21 }
  0xf8   :  { %v283_v37 = vpop.xlane.xlu1 %282  ;;  %v219_v12 = vpop.xlane.xlu0 %218 }
  0xf9   :  { %v366_v23 = vsub.f32 %v334_v42, %v350_v25  ;;  %v303_v1 = vadd.f32 %v283_v37, %v219_v12 }
  0xfa   :  { %v1097_v44 = vpop.eup %1096 }
  0xfb   :  { %v382_v35 = vadd.f32 1e-05, %v366_v23  ;;  %v335_v38 = vmul.f32 0.0625, %v303_v1  ;;  %v502_v39 = vmul.f32 %v1097_v44, %v486_v19  ;;  %v430_v43 = vmul.f32 %v1097_v44, %v414_v18 }
  0xfc   :  { %v142_v40 = vpop.xlane.xlu1 %141  ;;  %v94_v45 = vpop.xlane.xlu0 %93  ;;  %v489_v18 = vsub.f32 %v1396_v54, %v1615_v53 }
  0xfd   :  { %1100 = vrsqrt.f32 %v382_v35  ;;  %v367_v27 = vsub.f32 %v335_v38, %v351_v34  ;;  %v522_v17 = vmul.f32 %v1477_v63, %v502_v39  ;;  %v450_v41 = vmul.f32 %v1479_v3, %v430_v43 }
  0xfe   :  { %v1099_v26 = vpop.eup %1098  ;;  %v160_v29 = vadd.f32 %v142_v40, %v94_v45 }
  0xff   :  { %v383_v16 = vadd.f32 1e-05, %v367_v27  ;;  %v542_v51 = vadd.f32 %v1483_v24, %v522_v17  ;;  %v503_v0 = vmul.f32 %v1099_v26, %v487_v50  ;;  %v470_v6 = vadd.f32 %v1485_v28, %v450_v41 }
 0x100   :  { %v145_v7 = vpop.xlane.xlu1 %144  ;;  %v97_v33 = vpop.xlane.xlu0 %96  ;;  %v431_v30 = vmul.f32 %v1099_v26, %v415_v36  ;;  %v320_v57 = vmul.f32 0.0625, %v160_v29 }
 0x101   :  { %1102 = vrsqrt.f32 %v383_v16  ;;  %1041 = vmatprep.mubr.msk.f32.mxu0 %vm49_vm0, %v542_v51  ;;  %v161_v13 = vadd.f32 %v145_v7, %v97_v33  ;;  %1067 = vmatprep.mubr.msk.f32.mxu1 %vm49_vm0, %v470_v6  ;;  %v523_v31 = vmul.f32 %v1477_v63, %v503_v0 }
 0x102   :  { %v451_v22 = vmul.f32 %v1479_v3, %v431_v30  ;;  %v352_v56 = vmul.f32 %v320_v57, %v320_v57  ;;  %v418_v53 = vsub.f32 %v1427_v9, %v320_v57  ;;  %v490_v40 = vsub.f32 %v1422_v8, %v320_v57 }
 0x103   :  { %v543_v48 = vadd.f32 %v1483_v24, %v523_v31  ;;  %v321_v2 = vmul.f32 0.0625, %v161_v13 }
 0x104   :  { %v286_v49 = vpop.xlane.xlu1 %285  ;;  %v222_v32 = vpop.xlane.xlu0 %221  ;;  %v471_v4 = vadd.f32 %v1485_v28, %v451_v22 }
 0x105   :  { %v304_v58 = vadd.f32 %v286_v49, %v222_v32  ;;  %1042 = vmatmul.mubr.msk.f32.gmra.mxu0 %vm49_vm0, %v543_v48  ;;  %v353_v21 = vmul.f32 %v321_v2, %v321_v2  ;;  %v419_v17 = vsub.f32 %v1441_v15, %v321_v2  ;;  %v491_v26 = vsub.f32 %v1436_v14, %v321_v2 }
 0x106   :  { %1068 = vmatmul.mubr.msk.f32.gmra.mxu1 %vm49_vm0, %v471_v4 }
 0x107   :  { %v336_v10 = vmul.f32 0.0625, %v304_v58 }
 0x108   :  { %v289_v59 = vpop.xlane.xlu1 %288  ;;  %v225_v11 = vpop.xlane.xlu0 %224 }
 0x109   :  { %v368_v20 = vsub.f32 %v336_v10, %v352_v56  ;;  %v305_v62 = vadd.f32 %v289_v59, %v225_v11 }
 0x10a   :  { %v1101_v52 = vpop.eup %1100 }
 0x10b   :  { %v384_v25 = vadd.f32 1e-05, %v368_v20  ;;  %v337_v42 = vmul.f32 0.0625, %v305_v62  ;;  %v504_v37 = vmul.f32 %v1101_v52, %v488_v61  ;;  %v432_v12 = vmul.f32 %v1101_v52, %v416_v5 }
 0x10d   :  { %1104 = vrsqrt.f32 %v384_v25  ;;  %v369_v19 = vsub.f32 %v337_v42, %v353_v21  ;;  %v524_v23 = vmul.f32 %v1477_v63, %v504_v37  ;;  %v452_v47 = vmul.f32 %v1479_v3, %v432_v12 }
 0x10e   :  { %v1103_v1 = vpop.eup %1102 }
 0x10f   :  { %v385_v60 = vadd.f32 1e-05, %v369_v19  ;;  %v544_v44 = vadd.f32 %v1483_v24, %v524_v23  ;;  %v472_v34 = vadd.f32 %v1485_v28, %v452_v47  ;;  %v505_v35 = vmul.f32 %v1103_v1, %v489_v18 }
 0x110   :  { %v433_v38 = vmul.f32 %v1103_v1, %v417_v46 }
 0x111   :  { %1106 = vrsqrt.f32 %v385_v60  ;;  %1044 = vmatprep.mubr.msk.f32.mxu0 %vm49_vm0, %v544_v44  ;;  %1070 = vmatprep.mubr.msk.f32.mxu1 %vm49_vm0, %v472_v34  ;;  %v525_v54 = vmul.f32 %v1477_v63, %v505_v35 }
 0x112   :  { %v453_v39 = vmul.f32 %v1479_v3, %v433_v38 }
 0x113   :  { %v545_v43 = vadd.f32 %v1483_v24, %v525_v54 }
 0x114   :  { %v473_v55 = vadd.f32 %v1485_v28, %v453_v39 }
 0x115   :  { %1045 = vmatmul.mubr.msk.f32.gmra.mxu0 %vm49_vm0, %v545_v43 }
 0x116   :  { %1071 = vmatmul.mubr.msk.f32.gmra.mxu1 %vm49_vm0, %v473_v55 }
 0x11a   :  { %v1105_v45 = vpop.eup %1104 }
 0x11b   :  { %v506_v50 = vmul.f32 %v1105_v45, %v490_v40  ;;  %v434_v27 = vmul.f32 %v1105_v45, %v418_v53 }
 0x11d   :  { %v526_v36 = vmul.f32 %v1477_v63, %v506_v50  ;;  %v454_v41 = vmul.f32 %v1479_v3, %v434_v27 }
 0x11e   :  { %v1107_v16 = vpop.eup %1106 }
 0x11f   :  { %v546_v29 = vadd.f32 %v1483_v24, %v526_v36  ;;  %v474_v51 = vadd.f32 %v1485_v28, %v454_v41  ;;  %v507_v0 = vmul.f32 %v1107_v16, %v491_v26  ;;  %v435_v9 = vmul.f32 %v1107_v16, %v419_v17 }
 0x121   :  { %1047 = vmatprep.mubr.msk.f32.mxu0 %vm49_vm0, %v546_v29  ;;  %1073 = vmatprep.mubr.msk.f32.mxu1 %vm49_vm0, %v474_v51  ;;  %v527_v8 = vmul.f32 %v1477_v63, %v507_v0  ;;  %v455_v15 = vmul.f32 %v1479_v3, %v435_v9 }
 0x123   :  { %v547_v14 = vadd.f32 %v1483_v24, %v527_v8  ;;  %v475_v7 = vadd.f32 %v1485_v28, %v455_v15 }
 0x125   :  { %1048 = vmatmul.mubr.msk.f32.gmra.mxu0 %vm49_vm0, %v547_v14  ;;  %1074 = vmatmul.mubr.msk.f32.gmra.mxu1 %vm49_vm0, %v475_v7 }
 0x175   :  { %v1028_v33 = vpop.f32.mrf.mxu0  ;;  %v1054_v6 = vpop.f32.mrf.mxu1 }
 0x176   :  { %v864_v30 = vadd.f32 %v1054_v6, %v1028_v33 }
 0x177   :  { %v665_v13 = vpop.f32.mrf.mxu0  ;;  %v858_v31 = vpop.f32.mrf.mxu1 }
 0x178   :  { %938 = vst.msk [vmem:[%s1747_s4 + $0x8] sm:$0xff] %vm49_vm0, %v864_v30  ;;  %v859_v63 = vadd.f32 %v858_v31, %v665_v13 }
 0x17a   :  { %937 = vst.msk [vmem:[%s1747_s4] sm:$0xff] %vm49_vm0, %v859_v63 }
 0x185   :  { %v1031_v3 = vpop.f32.mrf.mxu0 }
 0x186   :  { %v1057_v24 = vpop.f32.mrf.mxu1 }
 0x187   :  { %v874_v28 = vadd.f32 %v1057_v24, %v1031_v3  ;;  %v675_v22 = vpop.f32.mrf.mxu0 }
 0x188   :  { %v868_v57 = vpop.f32.mrf.mxu1 }
 0x189   :  { %940 = vst.msk [vmem:[%s1747_s4 + $0x18] sm:$0xff] %vm49_vm0, %v874_v28  ;;  %v869_v49 = vadd.f32 %v868_v57, %v675_v22 }
 0x18b   :  { %939 = vst.msk [vmem:[%s1747_s4 + $0x10] sm:$0xff] %vm49_vm0, %v869_v49 }
 0x195   :  { %v1034_v32 = vpop.f32.mrf.mxu0 }
 0x196   :  { %v1060_v48 = vpop.f32.mrf.mxu1 }
 0x197   :  { %v884_v4 = vadd.f32 %v1060_v48, %v1034_v32  ;;  %v685_v58 = vpop.f32.mrf.mxu0 }
 0x198   :  { %v878_v2 = vpop.f32.mrf.mxu1 }
 0x199   :  { %942 = vst.msk [vmem:[%s1747_s4 + $0x28] sm:$0xff] %vm49_vm0, %v884_v4  ;;  %v879_v56 = vadd.f32 %v878_v2, %v685_v58 }
 0x19b   :  { %941 = vst.msk [vmem:[%s1747_s4 + $0x20] sm:$0xff] %vm49_vm0, %v879_v56 }
 0x1a5   :  { %v1037_v10 = vpop.f32.mrf.mxu0 }
 0x1a6   :  { %v1063_v59 = vpop.f32.mrf.mxu1 }
 0x1a7   :  { %v894_v11 = vadd.f32 %v1063_v59, %v1037_v10  ;;  %v695_v5 = vpop.f32.mrf.mxu0 }
 0x1a8   :  { %v888_v61 = vpop.f32.mrf.mxu1 }
 0x1a9   :  { %944 = vst.msk [vmem:[%s1747_s4 + $0x38] sm:$0xff] %vm49_vm0, %v894_v11  ;;  %v889_v20 = vadd.f32 %v888_v61, %v695_v5 }
 0x1ab   :  { %943 = vst.msk [vmem:[%s1747_s4 + $0x30] sm:$0xff] %vm49_vm0, %v889_v20 }
 0x1b5   :  { %v1040_v62 = vpop.f32.mrf.mxu0 }
 0x1b6   :  { %v1066_v52 = vpop.f32.mrf.mxu1 }
 0x1b7   :  { %v904_v21 = vadd.f32 %v1066_v52, %v1040_v62  ;;  %v705_v25 = vpop.f32.mrf.mxu0 }
 0x1b8   :  { %v898_v42 = vpop.f32.mrf.mxu1 }
 0x1b9   :  { %946 = vst.msk [vmem:[%s1747_s4 + $0x48] sm:$0xff] %vm49_vm0, %v904_v21  ;;  %v899_v37 = vadd.f32 %v898_v42, %v705_v25 }
 0x1bb   :  { %945 = vst.msk [vmem:[%s1747_s4 + $0x40] sm:$0xff] %vm49_vm0, %v899_v37 }
 0x1c5   :  { %v1043_v12 = vpop.f32.mrf.mxu0 }
 0x1c6   :  { %v1069_v18 = vpop.f32.mrf.mxu1 }
 0x1c7   :  { %v914_v19 = vadd.f32 %v1069_v18, %v1043_v12  ;;  %v715_v23 = vpop.f32.mrf.mxu0 }
 0x1c8   :  { %v908_v47 = vpop.f32.mrf.mxu1 }
 0x1c9   :  { %948 = vst.msk [vmem:[%s1747_s4 + $0x58] sm:$0xff] %vm49_vm0, %v914_v19  ;;  %v909_v1 = vadd.f32 %v908_v47, %v715_v23 }
 0x1cb   :  { %947 = vst.msk [vmem:[%s1747_s4 + $0x50] sm:$0xff] %vm49_vm0, %v909_v1 }
 0x1d5   :  { %v1046_v46 = vpop.f32.mrf.mxu0 }
 0x1d6   :  { %v1072_v60 = vpop.f32.mrf.mxu1 }
 0x1d7   :  { %v924_v44 = vadd.f32 %v1072_v60, %v1046_v46  ;;  %v725_v34 = vpop.f32.mrf.mxu0 }
 0x1d8   :  { %v918_v35 = vpop.f32.mrf.mxu1 }
 0x1d9   :  { %950 = vst.msk [vmem:[%s1747_s4 + $0x68] sm:$0xff] %vm49_vm0, %v924_v44  ;;  %v919_v38 = vadd.f32 %v918_v35, %v725_v34 }
 0x1db   :  { %949 = vst.msk [vmem:[%s1747_s4 + $0x60] sm:$0xff] %vm49_vm0, %v919_v38 }
 0x1e5   :  { %v1049_v54 = vpop.f32.mrf.mxu0  ;;  %v1075_v39 = vpop.f32.mrf.mxu1 }
 0x1e6   :  { %v934_v43 = vadd.f32 %v1075_v39, %v1049_v54 }
 0x1e7   :  { %v735_v55 = vpop.f32.mrf.mxu0  ;;  %v928_v53 = vpop.f32.mrf.mxu1 }
 0x1e8   :  { %952 = vst.msk [vmem:[%s1747_s4 + $0x78] sm:$0xff] %vm49_vm0, %v934_v43  ;;  %v929_v40 = vadd.f32 %v928_v53, %v735_v55 }
 0x1ea   :  { %951 = vst.msk [vmem:[%s1747_s4 + $0x70] sm:$0xff] %vm49_vm0, %v929_v40 }

</bundles_post_ra>
